<compile_context>
chip_gen: v5e
topology: v5e:2x2
jax: 0.10.0
libtpu: 0.0.40
codegen_flags: <defaults>
</compile_context>

<pallas_src>
import functools

import jax
import jax.numpy as jnp
from jax import lax
from jax.experimental import pallas as pl
from jax.experimental.pallas import tpu as pltpu


# --------------------------- tiled matmul (no bias) ---------------------------

def _matmul_kernel(x_ref, w_ref, o_ref, acc_ref):
    @pl.when(pl.program_id(2) == 0)
    def _():
        acc_ref[...] = jnp.zeros_like(acc_ref)

    acc_ref[...] += jnp.dot(x_ref[...], w_ref[...],
                            preferred_element_type=jnp.float32)

    @pl.when(pl.program_id(2) == pl.num_programs(2) - 1)
    def _():
        o_ref[...] = acc_ref[...].astype(o_ref.dtype)


def _linear(x, w, *, tm, tn, tk, out_dtype=None):
    M, K = x.shape
    Kw, N = w.shape
    assert K == Kw
    assert M % tm == 0 and N % tn == 0 and K % tk == 0, (M, N, K, tm, tn, tk)
    out_dtype = out_dtype or x.dtype
    grid = (M // tm, N // tn, K // tk)
    return pl.pallas_call(
        _matmul_kernel,
        out_shape=jax.ShapeDtypeStruct((M, N), out_dtype),
        grid_spec=pltpu.PrefetchScalarGridSpec(
            num_scalar_prefetch=0,
            grid=grid,
            in_specs=[
                pl.BlockSpec((tm, tk), lambda i, j, k: (i, k)),
                pl.BlockSpec((tk, tn), lambda i, j, k: (k, j)),
            ],
            out_specs=pl.BlockSpec((tm, tn), lambda i, j, k: (i, j)),
            scratch_shapes=[pltpu.VMEM((tm, tn), jnp.float32)],
        ),
        compiler_params=pltpu.CompilerParams(
            dimension_semantics=("parallel", "parallel", "arbitrary")),
    )(x, w)


# ------------------- GPT-J (interleaved) rotary embedding --------------------

def _rope_kernel(q_ref, k_ref, cos_ref, sin_ref, qo_ref, ko_ref):
    cos = cos_ref[...]
    sin = sin_ref[...]
    n = cos.shape[-1]
    lane = lax.broadcasted_iota(jnp.int32, cos.shape, dimension=1)
    even = (lane % 2) == 0

    def rotate_every_two(x):
        # y[2j] = -x[2j+1], y[2j+1] = x[2j]; neighbors never cross a pair
        # boundary, so wrap-around values of the rolls are never selected.
        x_next = pltpu.roll(x, shift=n - 1, axis=1)   # x[i+1]
        x_prev = pltpu.roll(x, shift=1, axis=1)       # x[i-1]
        return jnp.where(even, -x_next, x_prev)

    q = q_ref[...].astype(jnp.float32)
    k = k_ref[...].astype(jnp.float32)
    qo_ref[...] = (q * cos + rotate_every_two(q) * sin).astype(qo_ref.dtype)
    ko_ref[...] = (k * cos + rotate_every_two(k) * sin).astype(ko_ref.dtype)


def _gptj_rope_tables(position_ids, head_size, rotary_dim, base, num_heads):
    """cos/sin tables flattened to [T, H]; pass-through dims get cos=1, sin=0."""
    pos = position_ids.astype(jnp.float32)
    inv_freq = 1.0 / (base ** (jnp.arange(0, rotary_dim, 2, dtype=jnp.float32)
                               / rotary_dim))
    freqs = pos[:, None] * inv_freq[None, :]                    # [T, rot/2]
    cos2 = jnp.repeat(jnp.cos(freqs), 2, axis=-1)               # [T, rot]
    sin2 = jnp.repeat(jnp.sin(freqs), 2, axis=-1)
    T = pos.shape[0]
    pad = head_size - rotary_dim
    cos_h = jnp.concatenate([cos2, jnp.ones((T, pad), jnp.float32)], axis=-1)
    sin_h = jnp.concatenate([sin2, jnp.zeros((T, pad), jnp.float32)], axis=-1)
    return jnp.tile(cos_h, (1, num_heads)), jnp.tile(sin_h, (1, num_heads))


def _apply_gptj_rope(q, k, cos_full, sin_full, *, tm):
    T, H = q.shape
    assert T % tm == 0
    spec = pl.BlockSpec((tm, H), lambda i: (i, 0))
    return pl.pallas_call(
        _rope_kernel,
        out_shape=(jax.ShapeDtypeStruct((T, H), q.dtype),
                   jax.ShapeDtypeStruct((T, H), k.dtype)),
        grid_spec=pltpu.PrefetchScalarGridSpec(
            num_scalar_prefetch=0,
            grid=(T // tm,),
            in_specs=[spec, spec, spec, spec],
            out_specs=[spec, spec],
        ),
        compiler_params=pltpu.CompilerParams(dimension_semantics=("parallel",)),
    )(q, k, cos_full, sin_full)


# --------------------------- causal flash attention ---------------------------

def _flash_kernel(q_ref, k_ref, v_ref, o_ref, m_sc, l_sc, acc_sc, *, scale):
    qi = pl.program_id(1)
    ki = pl.program_id(2)
    tq = q_ref.shape[1]
    tk = k_ref.shape[1]

    @pl.when(ki == 0)
    def _():
        m_sc[...] = jnp.full_like(m_sc, -1e30)
        l_sc[...] = jnp.zeros_like(l_sc)
        acc_sc[...] = jnp.zeros_like(acc_sc)

    # Skip kv blocks entirely above the causal diagonal.
    @pl.when(ki * tk <= qi * tq + (tq - 1))
    def _():
        s = jnp.einsum('bqd,bkd->bqk', q_ref[...], k_ref[...],
                       preferred_element_type=jnp.float32) * scale
        rows = qi * tq + lax.broadcasted_iota(jnp.int32, (1, tq, tk), 1)
        cols = ki * tk + lax.broadcasted_iota(jnp.int32, (1, tq, tk), 2)
        mask = rows >= cols
        s = jnp.where(mask, s, -1e30)

        m_new = jnp.maximum(m_sc[...], s.max(axis=-1, keepdims=True))
        alpha = jnp.exp(m_sc[...] - m_new)
        p = jnp.exp(s - m_new)
        p = jnp.where(mask, p, 0.0)
        l_sc[...] = alpha * l_sc[...] + p.sum(axis=-1, keepdims=True)
        acc_sc[...] = alpha * acc_sc[...] + jnp.einsum(
            'bqk,bkd->bqd', p.astype(v_ref.dtype), v_ref[...],
            preferred_element_type=jnp.float32)
        m_sc[...] = m_new

    @pl.when(ki == pl.num_programs(2) - 1)
    def _():
        o_ref[...] = (acc_sc[...] * pl.reciprocal(l_sc[...], approx=True)
                      ).astype(o_ref.dtype)


def _flash_attention(q, k, v, *, scale, tq, tkv):
    nh, T, hd = q.shape
    assert T % tq == 0 and T % tkv == 0
    grid = (nh, T // tq, T // tkv)
    kernel = functools.partial(_flash_kernel, scale=scale)
    return pl.pallas_call(
        kernel,
        out_shape=jax.ShapeDtypeStruct((nh, T, hd), q.dtype),
        grid_spec=pltpu.PrefetchScalarGridSpec(
            num_scalar_prefetch=0,
            grid=grid,
            in_specs=[
                pl.BlockSpec((1, tq, hd), lambda h, qi, ki: (h, qi, 0)),
                pl.BlockSpec((1, tkv, hd), lambda h, qi, ki: (h, ki, 0)),
                pl.BlockSpec((1, tkv, hd), lambda h, qi, ki: (h, ki, 0)),
            ],
            out_specs=pl.BlockSpec((1, tq, hd), lambda h, qi, ki: (h, qi, 0)),
            scratch_shapes=[pltpu.VMEM((1, tq, 1), jnp.float32),
                            pltpu.VMEM((1, tq, 1), jnp.float32),
                            pltpu.VMEM((1, tq, hd), jnp.float32)],
        ),
        compiler_params=pltpu.CompilerParams(
            dimension_semantics=("parallel", "parallel", "arbitrary")),
    )(q, k, v)


# ------------------------------ module wrapper --------------------------------

def _choose_tile(dim, target, align):
    if dim <= target:
        return dim
    t = (target // align) * align
    while t >= align:
        if dim % t == 0:
            return t
        t -= align
    return dim


def gptj_attention(position_ids, hidden_states, w_qkv, w_out, *,
                   num_heads, rotary_dim, rope_theta=10000.0,
                   compute_dtype=jnp.bfloat16):
    """GPTJAttention.forward: hidden_states [T, H] -> [T, H]."""
    T, H = hidden_states.shape
    assert H % num_heads == 0
    head_size = H // num_heads
    assert rotary_dim % 2 == 0 and rotary_dim <= head_size
    scale = head_size ** -0.5

    x = hidden_states.astype(compute_dtype)
    wq = w_qkv.astype(compute_dtype)
    wo = w_out.astype(compute_dtype)

    tm = _choose_tile(T, 256, 16)            # token tile (bf16 sublane aligned)
    tk_h = _choose_tile(H, 512, 128)         # contraction tile over hidden
    tn_qkv = _choose_tile(3 * H, 256, 128)   # output tile over fused qkv dim
    tn_out = _choose_tile(H, 256, 128)

    # qkv projection (QKVParallelLinear, bias=False)
    qkv = _linear(x, wq, tm=tm, tn=tn_qkv, tk=tk_h)
    q, k, v = jnp.split(qkv, 3, axis=-1)

    # GPT-J style (interleaved, non-neox) rotary embedding on q, k
    cos_full, sin_full = _gptj_rope_tables(position_ids, head_size, rotary_dim,
                                           rope_theta, num_heads)
    q, k = _apply_gptj_rope(q, k, cos_full, sin_full, tm=tm)

    # causal scaled-dot-product attention, one head per leading grid axis
    def to_heads(t):
        return t.reshape(T, num_heads, head_size).transpose(1, 0, 2)
    qh, kh, vh = to_heads(q), to_heads(k), to_heads(v)
    tq = _choose_tile(T, 256, 16)
    tkv = _choose_tile(T, 256, 16)
    oh = _flash_attention(qh, kh, vh, scale=scale, tq=tq, tkv=tkv)
    attn = oh.transpose(1, 0, 2).reshape(T, H)

    # output projection (RowParallelLinear, bias=False)
    out = _linear(attn, wo, tm=tm, tn=tn_out, tk=tk_h)
    return out.astype(hidden_states.dtype)


# ------------------------------ pure-JAX reference -----------------------------

def reference_gptj_attention(position_ids, x, w_qkv, w_out,
                             num_heads, rotary_dim, rope_theta):
    T, H = x.shape
    hd = H // num_heads
    scale = hd ** -0.5
    qkv = x @ w_qkv
    q, k, v = jnp.split(qkv, 3, axis=-1)

    pos = position_ids.astype(jnp.float32)
    inv_freq = 1.0 / (rope_theta ** (jnp.arange(0, rotary_dim, 2,
                                                dtype=jnp.float32) / rotary_dim))
    freqs = pos[:, None] * inv_freq[None, :]
    cos = jnp.repeat(jnp.cos(freqs), 2, axis=-1)[:, None, :]   # [T,1,rot]
    sin = jnp.repeat(jnp.sin(freqs), 2, axis=-1)[:, None, :]

    def rope(t):
        t = t.reshape(T, num_heads, hd)
        t_rot, t_pass = t[..., :rotary_dim], t[..., rotary_dim:]
        x1 = t_rot[..., ::2]
        x2 = t_rot[..., 1::2]
        rot = jnp.stack([-x2, x1], axis=-1).reshape(T, num_heads, rotary_dim)
        t_rot = t_rot * cos + rot * sin
        return jnp.concatenate([t_rot, t_pass], axis=-1).reshape(T, H)

    q, k = rope(q), rope(k)
    qh = q.reshape(T, num_heads, hd).transpose(1, 0, 2)
    kh = k.reshape(T, num_heads, hd).transpose(1, 0, 2)
    vh = v.reshape(T, num_heads, hd).transpose(1, 0, 2)
    s = jnp.einsum('hqd,hkd->hqk', qh, kh) * scale
    causal = jnp.tril(jnp.ones((T, T), dtype=bool))
    s = jnp.where(causal[None], s, -jnp.inf)
    p = jax.nn.softmax(s, axis=-1)
    o = jnp.einsum('hqk,hkd->hqd', p, vh).transpose(1, 0, 2).reshape(T, H)
    return o @ w_out


if __name__ == "__main__":
    # Small GPT-J-like config, lane-dense hidden size:
    # hidden=128, heads=4 (head_size=32), rotary_dim=16 < head_size, seq=16.
    T, H, NH = 16, 128, 4
    ROT = 16
    THETA = 10000.0

    key = jax.random.PRNGKey(0)
    kx, kq, ko = jax.random.split(key, 3)
    x = jax.random.normal(kx, (T, H), dtype=jnp.float32)
    w_qkv = jax.random.normal(kq, (H, 3 * H), dtype=jnp.float32) * 0.05
    w_out = jax.random.normal(ko, (H, H), dtype=jnp.float32) * 0.05
    position_ids = jnp.arange(T, dtype=jnp.int32)

    out = gptj_attention(position_ids, x, w_qkv, w_out,
                         num_heads=NH, rotary_dim=ROT, rope_theta=THETA)
    out = jax.block_until_ready(out)

    ref = reference_gptj_attention(position_ids, x, w_qkv, w_out, NH, ROT, THETA)
    assert out.shape == (T, H)
    max_err = float(jnp.max(jnp.abs(out - ref)))
    assert jnp.allclose(out, ref, atol=3e-2, rtol=3e-2), \
        f"mismatch vs reference, max abs err {max_err}"

    print("KERNEL_OK")
</pallas_src>

<mosaic_0001>
module attributes {stable_mosaic.version = 11 : i64} {
  func.func @_matmul_kernel(%arg0: i32, %arg1: i32, %arg2: i32, %arg3: memref<16x128xbf16, #tpu.memory_space<vmem>>, %arg4: memref<128x128xbf16, #tpu.memory_space<vmem>>, %arg5: memref<16x128xbf16, #tpu.memory_space<vmem>>, %arg6: memref<16x128xf32, #tpu.memory_space<vmem>>) attributes {dimension_semantics = [#tpu.dimension_semantics<parallel>, #tpu.dimension_semantics<parallel>, #tpu.dimension_semantics<arbitrary>], iteration_bounds = array<i64: 1, 3, 1>, scalar_prefetch = 0 : i64, scratch_operands = 1 : i64, tpu.core_type = #tpu.core_type<tc>, window_params = [{transform_indices = @transform_0, window_bounds = array<i64: 16, 128>}, {transform_indices = @transform_1, window_bounds = array<i64: 128, 128>}, {transform_indices = @transform_2, window_bounds = array<i64: 16, 128>}]} {
    %c0_i32 = arith.constant 0 : i32
    %0 = arith.cmpi eq, %arg2, %c0_i32 : i32
    %1 = arith.extui %0 : i1 to i32
    %c0_i32_0 = arith.constant 0 : i32
    %2 = arith.cmpi ne, %1, %c0_i32_0 : i32
    scf.if %2 {
      %cst_10 = arith.constant 0.000000e+00 : f32
      %12 = vector.broadcast %cst_10 : f32 to vector<16x128xf32>
      %c0_11 = arith.constant 0 : index
      %c0_12 = arith.constant 0 : index
      %13 = vector.load %arg6[%c0_11, %c0_12] : memref<16x128xf32, #tpu.memory_space<vmem>>, vector<16x128xf32>
      tpu.vector_store %arg6[%c0_11, %c0_12], %12 {strides = array<i32>} : memref<16x128xf32, #tpu.memory_space<vmem>>, vector<16x128xf32>,
    } else {
    }
    %c0 = arith.constant 0 : index
    %c0_1 = arith.constant 0 : index
    %3 = vector.load %arg6[%c0, %c0_1] : memref<16x128xf32, #tpu.memory_space<vmem>>, vector<16x128xf32>
    %c0_2 = arith.constant 0 : index
    %c0_3 = arith.constant 0 : index
    %4 = vector.load %arg3[%c0_2, %c0_3] : memref<16x128xbf16, #tpu.memory_space<vmem>>, vector<16x128xbf16>
    %c0_4 = arith.constant 0 : index
    %c0_5 = arith.constant 0 : index
    %5 = vector.load %arg4[%c0_4, %c0_5] : memref<128x128xbf16, #tpu.memory_space<vmem>>, vector<128x128xbf16>
    %cst = arith.constant dense<0.000000e+00> : vector<16x128xf32>
    %6 = tpu.matmul %4, %5, %cst {dimension_numbers = #tpu.dot_dimension_numbers<[1], [0], [0], [1], [0, 0, 1, 1], [], []>} : vector<16x128xbf16>, vector<128x128xbf16>, vector<16x128xf32> -> vector<16x128xf32>
    %7 = arith.addf %3, %6 : vector<16x128xf32>
    %c0_6 = arith.constant 0 : index
    %c0_7 = arith.constant 0 : index
    %8 = vector.load %arg6[%c0_6, %c0_7] : memref<16x128xf32, #tpu.memory_space<vmem>>, vector<16x128xf32>
    tpu.vector_store %arg6[%c0_6, %c0_7], %7 {strides = array<i32>} : memref<16x128xf32, #tpu.memory_space<vmem>>, vector<16x128xf32>,
    %c0_i32_8 = arith.constant 0 : i32
    %9 = arith.cmpi eq, %arg2, %c0_i32_8 : i32
    %10 = arith.extui %9 : i1 to i32
    %c0_i32_9 = arith.constant 0 : i32
    %11 = arith.cmpi ne, %10, %c0_i32_9 : i32
    scf.if %11 {
      %c0_10 = arith.constant 0 : index
      %c0_11 = arith.constant 0 : index
      %12 = vector.load %arg6[%c0_10, %c0_11] : memref<16x128xf32, #tpu.memory_space<vmem>>, vector<16x128xf32>
      %13 = arith.truncf %12 : vector<16x128xf32> to vector<16x128xbf16>
      %c0_12 = arith.constant 0 : index
      %c0_13 = arith.constant 0 : index
      %14 = vector.load %arg5[%c0_12, %c0_13] : memref<16x128xbf16, #tpu.memory_space<vmem>>, vector<16x128xbf16>
      tpu.vector_store %arg5[%c0_12, %c0_13], %13 {strides = array<i32>} : memref<16x128xbf16, #tpu.memory_space<vmem>>, vector<16x128xbf16>,
    } else {
    }
    return
  }
  func.func @transform_0(%arg0: i32, %arg1: i32, %arg2: i32) -> (i32, i32) {
    %c0_i32 = arith.constant 0 : i32
    return %arg0, %arg2 : i32, i32
  }
  func.func @transform_1(%arg0: i32, %arg1: i32, %arg2: i32) -> (i32, i32) {
    %c0_i32 = arith.constant 0 : i32
    return %arg2, %arg1 : i32, i32
  }
  func.func @transform_2(%arg0: i32, %arg1: i32, %arg2: i32) -> (i32, i32) {
    %c0_i32 = arith.constant 0 : i32
    return %arg0, %arg1 : i32, i32
  }
}

</mosaic_0001>

<bundles_post_ra>
// kernel: tpu_custom_call.1
= control target key start
LH: loop header
LB: loop body
LE: loop exit
PB: predicated region body
PF: predicated region fallthrough
CT: control target
= control target key end

     0   :  { %7 = vsyncpa [#allocation4], 0  ;;  %s916_s0 = inlined_call_operand.hbm [shape: bf16[16,128], index: 0, kind: input, shape index: {}]   ;;  %s917_s1 = inlined_call_operand.hbm [shape: bf16[128,384], index: 1, kind: input, shape index: {}]   ;;  %s918_s2 = inlined_call_operand.hbm [shape: bf16[16,384], index: 2, kind: output, shape index: {}]  }
   0x1   :  { %8 = vsyncpa [#allocation7], 0 }
   0x2   :  { %10 = vsyncpa [#allocation7 + $0x1], 0 }
   0x3   :  { %11 = vsyncpa [#allocation5], 0 }
   0x4   :  { %13 = vsyncpa [#allocation5 + $0x1], 0  ;;  %s763_s9 = smov 0   ;;  %s765_s10 = smov 0  }
   0x5   :  { %s767_s11 = smov 0   ;;  %s769_s12 = smov 0  }
   0x6   :  { %s771_s13 = smov 0   ;;  %s773_s14 = smov 0  }
   0x7 LB: > { %s449_s15 = sadd.s32 4294967295, %s739_s14   ;;  %s450_s16 = sadd.s32 4294967294, %s739_s14   ;;  %s739_s14 = sphi %s773_s14, %s19_s14   ;;  %s735_s13 = sphi %s771_s13, %s932_s13   ;;  %s731_s12 = sphi %s769_s12, %s931_s12   ;;  %s727_s11 = sphi %s767_s11, %s930_s11   ;;  %s723_s10 = sphi %s765_s10, %s929_s10   ;;  %s719_s9 = sphi %s763_s9, %s928_s9  }
   0x8   : > { %p88_p0 = scmp.ne.s32.totalorder %s723_s10, %s719_s9  ;;  %p797_p1 = scmp.eq.s32.totalorder %s449_s15, 0 }
   0x9   : > { %p801_p2 = scmp.eq.s32.totalorder %s449_s15, 2  ;;  %p120_p3 = scmp.eq.s32.totalorder %s450_s16, 2 }
   0xa   : > { %p807_p4 = por %p797_p1, %p88_p0  ;;  %p451_p5 = scmp.ge.s32.totalorder %s739_s14, 1 }
   0xb   : > { %p812_p6 = por %p120_p3, %p88_p0  ;;  %p127_p7 = scmp.lt.s32.totalorder %s739_s14, 4 }
   0xc   : > { %s142_s23 = sshll.u32 %s916_s0, 4  ;;  %s741_s25 = smov [#allocation3]   ;;  %s143_s23 = int_to_ptr.hbm [resolvable:$true] %s142_s23 }
   0xd   : > { %p820_p8 = pnand %p451_p5, %p127_p7  ;;  %s144_s26 = sshll.u32 %s741_s25, 4  ;;  %s145_s26 = int_to_ptr.vmem [resolvable:$true] %s144_s26 }
   0xe   : > { %s919_s27 = smov 64   ;;  %s743_s28 = smov 4  }
   0xf   : > { %p522_p9 = pneg %p820_p8  ;;  %s34_s29 = sadd.s32 1, %s735_s13 }
  0x10   : > { %p36_p11 = scmp.ge.s32.totalorder %s34_s29, 3  ;;  %s75_s30 = sadd.s32 1, %s727_s11 }
  0x11   : > { %p523_p10 = pnand %p522_p9, %p797_p1  ;;  %p82_p12 = scmp.ne.s32.totalorder %s727_s11, %s723_s10 }
  0x12   : > { %p83_p13 = scmp.eq.s32.totalorder %s739_s14, 0  ;;  %s934_s29 = smov (%p36_p11, %s34_s29), 0 }
  0x13   : > { %525 = dma.hbm_to_vmem [thread:$0]  (!%p523_p10), %s143_s23, 128, %s145_s26, [#allocation4], %s919_s27, %s919_s27, %s743_s28  }
  0x14   : > { %p838_p0 = por %p83_p13, %p82_p12  ;;  %p844_p3 = por %p801_p2, %p82_p12 }
  0x15   : > { %s71_s5 = ssub.s32 %s735_s13, %s934_s29  ;;  %p535_p5 = scmp.lt.s32.totalorder %s739_s14, 3 }
  0x16   : > { %p73_p7 = scmp.eq.s32.totalorder %s71_s5, 0  ;;  %s158_s6 = sand.u32 1, %s727_s11  }
  0x17   : > { %s454_s7 = sshll.u32 %s158_s6, 6  ;;  %s455_s15 = sshll.u32 %s735_s13, 2 }
  0x18   : > { %s853_s8 = scalar_select %p73_p7, %s727_s11, %s75_s30  }
  0x19   : > { %s169_s22 = scalar_lea.hbm %s917_s1, %s455_s15  ;;  %s162_s23 = scalar_lea.vmem [#allocation6], %s454_s7 }
  0x1a   : > { %s172_s25 = sshll.u32 %s162_s23, 4  ;;  %s170_s18 = sshll.u32 %s169_s22, 4  ;;  %s173_s25 = int_to_ptr.vmem [resolvable:$true] %s172_s25  ;;  %s171_s18 = int_to_ptr.hbm [resolvable:$true] %s170_s18 }
  0x1b   : > { %p527_p2 = pnand %p535_p5, %p838_p0  ;;  %s159_s26 = scalar_lea.sflag [#allocation7], %s158_s6 }
  0x1c   : > { %s744_s27 = smov 192   ;;  %s927_s5 = smov 64  }
  0x1d   : > { %529 = dma.hbm_to_vmem [thread:$0]  (!%p527_p2), %s171_s18, 1024, %s173_s25, %s159_s26, %s744_s27, %s927_s5, %s743_s28  }
  0x1e   : > { %184 = sbr.rel (%p820_p8) target bundleno = 213 (0xd5), region = 28 }
  0x23   : > { %706 = dma.done.wait (%p797_p1), [#allocation4], 128  }
  0x24   : > { %708 = vsyncadd (%p797_p1), [#allocation4], 4294967168  ;;  %s870_s30 = sand.u32 1, %s723_s10  }
  0x25   : > { %s458_s3 = sshll.u32 %s870_s30, 6  ;;  %s192_s6 = scalar_lea.sflag [#allocation7], %s870_s30 }
  0x26   : > { %s195_s7 = scalar_lea.vmem [#allocation6], %s458_s3 }
  0x27   : > { %710 = dma.done.wait (%p807_p4), %s192_s6, 1024  }
  0x28   : > { %712 = vsyncadd (%p807_p4), %s192_s6, 4294966272  ;;  %v508_v0 = vld [vmem:[%s195_s7 + $0x38] sm:$0xff]  ;;  %v507_v1 = vld [vmem:[%s195_s7 + $0x30] sm:$0xff]  ;;  %s459_s17 = sshll.u32 %s870_s30, 3  ;;  %s497_s19 = sshll.u32 %s731_s12, 2 }
  0x29   : > { %300 = vmatpush.bf16.msra.mxu0 %v508_v0  ;;  %v506_v2 = vld [vmem:[%s195_s7 + $0x28] sm:$0xff]  ;;  %v505_v3 = vld [vmem:[%s195_s7 + $0x20] sm:$0xff]  ;;  %v504_v4 = vld [vmem:[%s195_s7 + $0x18] sm:$0xff]  ;;  %s341_s28 = scalar_lea.hbm %s918_s2, %s497_s19  ;;  %s216_s15 = scalar_lea.vmem [#allocation8], %s459_s17 }
  0x2a   : > { %v503_v5 = vld [vmem:[%s195_s7 + $0x10] sm:$0xff]  ;;  %v502_v6 = vld [vmem:[%s195_s7 + $0x8] sm:$0xff]  ;;  %v501_v7 = vld [vmem:[%s195_s7] sm:$0xff]  ;;  %s342_s16 = sshll.u32 %s216_s15, 4  ;;  %s344_s21 = sshll.u32 %s341_s28, 4  ;;  %s343_s16 = int_to_ptr.vmem [resolvable:$true] %s342_s16  ;;  %s345_s21 = int_to_ptr.hbm [resolvable:$true] %s344_s21 }
  0x2b   : > { %v500_v8 = vld [vmem:[#allocation3] sm:$0xff]  ;;  %s328_s22 = scalar_lea.sflag [#allocation5], %s870_s30  ;;  %s667_s23 = sshra.s32 %s345_s21, 4  ;;  %s668_s23 = int_to_ptr.hbm [resolvable:$true] %s667_s23 }
  0x2c   : > { %s669_s25 = scalar_lea.hbm %s668_s23, 8  ;;  %s673_s26 = scalar_lea.hbm %s918_s2, 24 }
  0x2d   : > { %301 = vmatpush.bf16.msra.mxu0 %v507_v1  ;;  %p670_p1 = scmp.ne.s32.totalorder %s668_s23, %s669_s25  ;;  %p674_p9 = scmp.lt.s32.totalorder %s668_s23, %s918_s2 }
  0x2e   : > { %p675_p10 = scmp.lt.s32.totalorder %s673_s26, %s669_s25 }
  0x2f   : > { %p671_p4 = pnand %p670_p1, %p844_p3 }
  0x30   : > { %p676_p11 = por %p675_p10, %p674_p9 }
  0x31   : > { %302 = vmatpush.bf16.msra.mxu0 %v506_v2  ;;  %p672_p8 = pneg %p671_p4 }
  0x33   : > { %p677_p12 = pnand %p676_p11, %p672_p8 }
  0x35   : > { %303 = vmatpush.bf16.msra.mxu0 %v505_v3 }
  0x39   : > { %304 = vmatpush.bf16.msra.mxu0 %v504_v4 }
  0x3d   : > { %305 = vmatpush.bf16.msra.mxu0 %v503_v5 }
  0x41   : > { %306 = vmatpush.bf16.msra.mxu0 %v502_v6 }
  0x45   : > { %307 = vmatpush.bf16.msra.mxu0 %v501_v7 }
  0x48   : > { %308 = vmatmul.bf16.vlgmr.msra.gmra.mxu0 %v500_v8 }
  0xc5   : > { %v309_v9 = vpop.f32.mrf.mxu0 }
  0xcd   : > { %v311_v10 = vpop.f32.mrf.mxu0 }
  0xce   : > { %v512_v11 = vpack.c.bf16 %v311_v10, %v309_v9 }
  0xd0   : > { %513 = vst [vmem:[%s216_s15] sm:$0xff] %v512_v11  }
  0xd1   : > { %680 = shalt.err (!%p677_p12)
}
  0xd2   : > { %s745_s30 = smov 64   ;;  %s746_s6 = smov 192  }
  0xd3   : > { %s747_s7 = smov 4  }
  0xd4   : > { %520 = dma.vmem_to_hbm [thread:$0]  (%p844_p3), %s343_s16, 128, %s345_s21, %s328_s22, %s745_s30, %s746_s6, %s747_s7  }
  0xd5 PF: > { %p537_p13 = scmp.ge.s32.totalorder %s739_s14, 2  ;;  %s359_s17 = sand.u32 1, %s719_s9  }
  0xd6   : > { %s360_s19 = scalar_lea.sflag [#allocation5], %s359_s17 }
  0xd7   : > { %p531_p0 = pnand %p537_p13, %p812_p6 }
  0xd9   : > { %p532_p5 = pneg %p531_p0 }
  0xdb   : > { %714 = dma.done.wait (%p532_p5), %s360_s19, 128  }
  0xdc   : > { %716 = vsyncadd (%p532_p5), %s360_s19, 4294967168  ;;  %s19_s14 = sadd.s32 1, %s739_s14   ;;  %s928_s9 = smov %s723_s10 }
  0xdd   : > { %p16_p7 = scmp.ge.s32.totalorder %s19_s14, 5   ;;  %s929_s10 = smov %s727_s11 }
  0xde   : > { %s930_s11 = smov %s853_s8  ;;  %s931_s12 = smov %s735_s13 }
  0xdf   : > { %s932_s13 = smov %s934_s29  ;;  %18 = sbr.rel (!%p16_p7) target bundleno = 7 (0x7), region = 87 }
  0xe4   :  { %366 = vsyncpa [#allocation4], 1 }
  0xe5   :  { %368 = vsyncpa [#allocation4 + $0x1], 1 }
  0xe6   :  { %369 = vsyncpa [#allocation7], 1 }
  0xe7   :  { %371 = vsyncpa [#allocation7 + $0x1], 1 }
  0xe8   :  { %372 = vsyncpa [#allocation5], 1 }
  0xe9   :  { %374 = vsyncpa [#allocation5 + $0x1], 1 }

</bundles_post_ra>
